<compile_context>
chip_gen: v6e
topology: v6e:2x2x1
jax: 0.10.0
libtpu: 0.0.40
codegen_flags: <defaults>
</compile_context>

<pallas_src>
import jax
import jax.numpy as jnp
from jax.experimental import pallas as pl
from jax.experimental.pallas import tpu as pltpu


def _linear_kernel(x_ref, w_ref, b_ref, o_ref):
    # x_ref: [TILE_B, D], w_ref: [D, N], b_ref: [1, N], o_ref: [TILE_B, N]
    x = x_ref[...].astype(jnp.float32)
    w = w_ref[...].astype(jnp.float32)
    b = b_ref[...].astype(jnp.float32)
    y = jnp.dot(x, w, preferred_element_type=jnp.float32) + b
    o_ref[...] = y.astype(o_ref.dtype)


def classification_net_forward(x, w_t, b, *, tile_b=512):
    """ClassificationNet.forward: y = x @ w_t + b.

    x:   [B, D]            input features
    w_t: [D, 2]            transposed torch Linear weight (weight.T)
    b:   [1, 2]            torch Linear bias as a row vector
    """
    B, D = x.shape
    D_w, N = w_t.shape
    assert D_w == D, (D_w, D)
    assert b.shape == (1, N), b.shape

    # Legalize the batch tile: tile_b must be a multiple of 8 or equal to B.
    if B <= tile_b:
        tile_b = B
    else:
        tile_b = max(8, (tile_b // 8) * 8)

    grid = (pl.cdiv(B, tile_b),)

    out = pl.pallas_call(
        _linear_kernel,
        out_shape=jax.ShapeDtypeStruct((B, N), x.dtype),
        grid=grid,
        in_specs=[
            # activations: tiled over the batch axis (pipelined / double-buffered)
            pl.BlockSpec((tile_b, D), lambda i: (i, 0)),
            # weight + bias: same block every step -> VMEM-resident across the grid
            pl.BlockSpec((D, N), lambda i: (0, 0)),
            pl.BlockSpec((1, N), lambda i: (0, 0)),
        ],
        out_specs=pl.BlockSpec((tile_b, N), lambda i: (i, 0)),
        compiler_params=pltpu.CompilerParams(
            dimension_semantics=("parallel",)),
    )(x, w_t, b)
    return out


def _reference(x, w_t, b):
    """Plain-JAX reference of the same forward pass."""
    return x @ w_t + b


if __name__ == "__main__":
    B, D, N = 64, 32, 2  # small shapes: batch=64, n_feature=32, 2 classes

    key = jax.random.PRNGKey(0)
    k_x, k_w, k_b = jax.random.split(key, 3)

    x = jax.random.normal(k_x, (B, D), dtype=jnp.float32)
    # torch Linear(n_feature, 2) parameters, weight stored transposed: [D, 2]
    w_t = jax.random.normal(k_w, (D, N), dtype=jnp.float32) * 0.1
    b = jax.random.normal(k_b, (1, N), dtype=jnp.float32) * 0.01

    ref = _reference(x, w_t, b)

    # Default tile (single grid step since B <= 512).
    y0 = jax.block_until_ready(classification_net_forward(x, w_t, b))
    assert y0.shape == (B, N), y0.shape
    assert jnp.allclose(y0, ref, atol=1e-5, rtol=1e-5)

    # Explicit smaller tile to exercise a multi-step, pipelined batch grid.
    y1 = jax.block_until_ready(classification_net_forward(x, w_t, b, tile_b=16))
    assert jnp.allclose(y1, ref, atol=1e-5, rtol=1e-5)

    print("KERNEL_OK")
</pallas_src>

<mosaic_0001>
module attributes {stable_mosaic.version = 11 : i64} {
  func.func @_linear_kernel(%arg0: i32, %arg1: memref<64x32xf32, #tpu.memory_space<vmem>>, %arg2: memref<32x2xf32, #tpu.memory_space<vmem>>, %arg3: memref<1x2xf32, #tpu.memory_space<vmem>>, %arg4: memref<64x2xf32, #tpu.memory_space<vmem>>) attributes {dimension_semantics = [#tpu.dimension_semantics<parallel>], iteration_bounds = array<i64: 1>, scalar_prefetch = 0 : i64, scratch_operands = 0 : i64, tpu.core_type = #tpu.core_type<tc>, window_params = [{transform_indices = @transform_0, window_bounds = array<i64: 64, 32>}, {pipeline_mode = #tpu.pipeline_mode<synchronous>, transform_indices = @transform_1, window_bounds = array<i64: 32, 2>}, {pipeline_mode = #tpu.pipeline_mode<synchronous>, transform_indices = @transform_2, window_bounds = array<i64: 1, 2>}, {transform_indices = @transform_3, window_bounds = array<i64: 64, 2>}]} {
    %c0 = arith.constant 0 : index
    %c0_0 = arith.constant 0 : index
    %0 = vector.load %arg1[%c0, %c0_0] : memref<64x32xf32, #tpu.memory_space<vmem>>, vector<64x32xf32>
    %c0_1 = arith.constant 0 : index
    %c0_2 = arith.constant 0 : index
    %1 = vector.load %arg2[%c0_1, %c0_2] : memref<32x2xf32, #tpu.memory_space<vmem>>, vector<32x2xf32>
    %c0_3 = arith.constant 0 : index
    %c0_4 = arith.constant 0 : index
    %2 = vector.load %arg3[%c0_3, %c0_4] : memref<1x2xf32, #tpu.memory_space<vmem>>, vector<1x2xf32>
    %cst = arith.constant dense<0.000000e+00> : vector<64x2xf32>
    %3 = tpu.matmul %0, %1, %cst {dimension_numbers = #tpu.dot_dimension_numbers<[1], [0], [0], [1], [0, 0, 1, 1], [], []>} : vector<64x32xf32>, vector<32x2xf32>, vector<64x2xf32> -> vector<64x2xf32>
    %4 = vector.broadcast %2 : vector<1x2xf32> to vector<64x2xf32>
    %5 = arith.addf %3, %4 : vector<64x2xf32>
    %c0_5 = arith.constant 0 : index
    %c0_6 = arith.constant 0 : index
    %6 = vector.load %arg4[%c0_5, %c0_6] : memref<64x2xf32, #tpu.memory_space<vmem>>, vector<64x2xf32>
    tpu.vector_store %arg4[%c0_5, %c0_6], %5 {strides = array<i32>} : memref<64x2xf32, #tpu.memory_space<vmem>>, vector<64x2xf32>,
    return
  }
  func.func @transform_0(%arg0: i32) -> (i32, i32) {
    %c0_i32 = arith.constant 0 : i32
    %c0_i32_0 = arith.constant 0 : i32
    return %arg0, %c0_i32 : i32, i32
  }
  func.func @transform_1(%arg0: i32) -> (i32, i32) {
    %c0_i32 = arith.constant 0 : i32
    %c0_i32_0 = arith.constant 0 : i32
    %c0_i32_1 = arith.constant 0 : i32
    return %c0_i32, %c0_i32_0 : i32, i32
  }
  func.func @transform_2(%arg0: i32) -> (i32, i32) {
    %c0_i32 = arith.constant 0 : i32
    %c0_i32_0 = arith.constant 0 : i32
    %c0_i32_1 = arith.constant 0 : i32
    return %c0_i32, %c0_i32_0 : i32, i32
  }
  func.func @transform_3(%arg0: i32) -> (i32, i32) {
    %c0_i32 = arith.constant 0 : i32
    %c0_i32_0 = arith.constant 0 : i32
    return %arg0, %c0_i32 : i32, i32
  }
}

</mosaic_0001>

<bundles_post_ra>
// kernel: tpu_custom_call.1
= control target key start
LH: loop header
LB: loop body
LE: loop exit
PB: predicated region body
PF: predicated region fallthrough
CT: control target
= control target key end

     0   :  { %vm33_vm0 = vcmask 261120   ;;  %vm163_vm1 = vcmask 15360   ;;  %s324_s1 = inlined_call_operand.vmem [shape: f32[32,2], index: 1, kind: input, shape index: {}]   ;;  %s325_s0 = inlined_call_operand.vmem [shape: f32[64,32], index: 0, kind: input, shape index: {}]   ;;  %s326_s2 = inlined_call_operand.vmem [shape: f32[1,2], index: 2, kind: input, shape index: {}]   ;;  %s327_s3 = inlined_call_operand.vmem [shape: f32[64,2], index: 3, kind: output, shape index: {}]  }
   0x1   :  { %v25_v0 = vld [vmem:[%s324_s1 + $0x18] sm:$0xff]  ;;  %v24_v1 = vld [vmem:[%s324_s1 + $0x10] sm:$0xff]  ;;  %v23_v2 = vld [vmem:[%s324_s1 + $0x8] sm:$0xff] }
   0x2   :  { %197 = vmatprep.subr.mxu0 %v25_v0  ;;  %217 = vmatprep.subr.mxu1 %v25_v0  ;;  %v22_v3 = vld [vmem:[%s324_s1] sm:$0xff]  ;;  %v15_v6 = vld [vmem:[%s325_s0 + $0x8] sm:$0xff]  ;;  %v16_v8 = vld [vmem:[%s325_s0 + $0x10] sm:$0xff] }
   0x3   :  { %198 = vmatpush3.msra.mxu0 %v25_v0  ;;  %221 = vmatpush3.msra.mxu1 %v25_v0  ;;  %v14_v4 = vld [vmem:[%s325_s0] sm:$0xff]  ;;  %v19_v7 = vld [vmem:[%s325_s0 + $0x28] sm:$0xff]  ;;  %v20_v9 = vld [vmem:[%s325_s0 + $0x30] sm:$0xff] }
   0x4   :  { %199 = vmatprep.subr.mxu0 %v24_v1  ;;  %218 = vmatprep.subr.mxu1 %v24_v1  ;;  %v18_v5 = vld [vmem:[%s325_s0 + $0x20] sm:$0xff]  ;;  %v17_v10 = vld [vmem:[%s325_s0 + $0x18] sm:$0xff] }
   0x5   :  { %200 = vmatpush3.msra.mxu0 %v24_v1  ;;  %222 = vmatpush3.msra.mxu1 %v24_v1  ;;  %v21_v11 = vld [vmem:[%s325_s0 + $0x38] sm:$0xff]  ;;  %v176_v12 = vld [vmem:[%s326_s2] ss:$0 sm:$0xff] }
   0x6   :  { %201 = vmatprep.subr.mxu0 %v23_v2  ;;  %219 = vmatprep.subr.mxu1 %v23_v2 }
   0x7   :  { %202 = vmatpush3.msra.mxu0 %v23_v2  ;;  %223 = vmatpush3.msra.mxu1 %v23_v2 }
   0x8   :  { %203 = vmatprep.subr.mxu0 %v22_v3  ;;  %220 = vmatprep.subr.mxu1 %v22_v3 }
   0x9   :  { %204 = vmatpush3.msra.mxu0 %v22_v3  ;;  %224 = vmatpush3.msra.mxu1 %v22_v3 }
   0xa   :  { %205 = vmatprep.mubr.msk.f32.mxu0 %vm33_vm0, %v14_v4  ;;  %211 = vmatprep.mubr.msk.f32.mxu1 %vm33_vm0, %v18_v5 }
   0xb   :  { %206 = vmatmul.mubr.msk.f32.vlgmr.msra.gmra.mxu0 %vm33_vm0, %v15_v6  ;;  %212 = vmatmul.mubr.msk.f32.vlgmr.msra.gmra.mxu1 %vm33_vm0, %v19_v7 }
   0xc   :  { %208 = vmatprep.mubr.msk.f32.mxu0 %vm33_vm0, %v16_v8  ;;  %214 = vmatprep.mubr.msk.f32.mxu1 %vm33_vm0, %v20_v9 }
   0xf   :  { %209 = vmatmul.mubr.msk.f32.gmra.mxu0 %vm33_vm0, %v17_v10  ;;  %215 = vmatmul.mubr.msk.f32.gmra.mxu1 %vm33_vm0, %v21_v11 }
  0xcb   :  { %v207_v13 = vpop.f32.mrf.mxu0  ;;  %v213_v14 = vpop.f32.mrf.mxu1 }
  0xcc   :  { %v130_v15 = vadd.f32 %v207_v13, %v176_v12  ;;  %v150_v16 = vadd.f32 %v213_v14, %v176_v12 }
  0xcd   :  { %v124_v17 = vpop.f32.mrf.mxu0  ;;  %v144_v18 = vpop.f32.mrf.mxu1 }
  0xce   :  { %165 = vst.msk [vmem:[%s327_s3 + $0x8] sm:$0xff] %vm163_vm1, %v130_v15  ;;  %169 = vst.msk [vmem:[%s327_s3 + $0x28] sm:$0xff] %vm163_vm1, %v150_v16  ;;  %v125_v19 = vadd.f32 %v176_v12, %v124_v17  ;;  %v145_v20 = vadd.f32 %v176_v12, %v144_v18 }
  0xcf   :  { %v210_v21 = vpop.f32.mrf.mxu0  ;;  %v216_v22 = vpop.f32.mrf.mxu1 }
  0xd0   :  { %164 = vst.msk [vmem:[%s327_s3] sm:$0xff] %vm163_vm1, %v125_v19  ;;  %168 = vst.msk [vmem:[%s327_s3 + $0x20] sm:$0xff] %vm163_vm1, %v145_v20  ;;  %v140_v23 = vadd.f32 %v210_v21, %v176_v12  ;;  %v160_v24 = vadd.f32 %v216_v22, %v176_v12 }
  0xd1   :  { %v134_v25 = vpop.f32.mrf.mxu0  ;;  %v154_v26 = vpop.f32.mrf.mxu1 }
  0xd2   :  { %167 = vst.msk [vmem:[%s327_s3 + $0x18] sm:$0xff] %vm163_vm1, %v140_v23  ;;  %171 = vst.msk [vmem:[%s327_s3 + $0x38] sm:$0xff] %vm163_vm1, %v160_v24  ;;  %v135_v27 = vadd.f32 %v176_v12, %v134_v25  ;;  %v155_v28 = vadd.f32 %v176_v12, %v154_v26 }
  0xd4   :  { %166 = vst.msk [vmem:[%s327_s3 + $0x10] sm:$0xff] %vm163_vm1, %v135_v27  ;;  %170 = vst.msk [vmem:[%s327_s3 + $0x30] sm:$0xff] %vm163_vm1, %v155_v28 }

</bundles_post_ra>
